<compile_context>
chip_gen: v6e
topology: v6e:2x2x1
jax: 0.10.0
libtpu: 0.0.40
codegen_flags: <defaults>
</compile_context>

<pallas_src>
import math
import functools

import jax
import jax.numpy as jnp
from jax import lax
from jax.experimental import pallas as pl
from jax.experimental.pallas import tpu as pltpu

_NEG_INF = -1e30            # finite mask sentinel (no -inf / NaN hazards)


# --------------------------------------------------------------------------
# Small helpers.
# --------------------------------------------------------------------------
def _vmem_limit_bytes():
    """Generation-aware VMEM budget: ~3/4 of physical VMEM (48 MiB on v7x,
    96 MiB on v5e/v6e); conservative fallback if the query is unavailable."""
    try:
        cap = pltpu.get_tpu_info().vmem_capacity_bytes
    except Exception:
        cap = 64 << 20       # assume the smallest (v7x-sized) VMEM
    return int(min(cap * 3 // 4, 100 << 20))


def _round_up(x, m):
    return -(-x // m) * m


def _pick_tile(dim, target):
    """Largest tile <= target dividing dim, preferring multiples of 128
    (lane-dense), then 8 (sublane); the full dim if it already fits."""
    if dim <= target:
        return dim
    for step in (128, 8):
        t = target - target % step
        while t >= step:
            if dim % t == 0:
                return t
            t -= step
    return dim               # rare (prime dims); block = full dim is legal


def _largest_nested_tile(n, limit, step):
    """Largest multiple of `step` dividing n that is <= max(limit, step)."""
    best, t, top = step, step, max(limit, step)
    while t <= top:
        if n % t == 0:
            best = t
        t += step
    return best


def _pick_head_group(n_head, head_dim):
    """Smallest head-group size g (dividing n_head) whose packed width
    g*head_dim is lane-dense (multiple of 128) or spans the whole embedding,
    keeping the packed width modest for VMEM."""
    c = n_head * head_dim
    for g in range(1, n_head + 1):
        if n_head % g:
            continue
        w = g * head_dim
        if w > 512:
            break
        if w % 128 == 0 or w == c:
            return g
    return n_head            # always-legal fallback: one full-C output block


# --------------------------------------------------------------------------
# Tiled matmul + bias kernel (c_attn and c_proj projections).
# --------------------------------------------------------------------------
def _linear_kernel(x_ref, w_ref, b_ref, o_ref, acc_ref):
    @pl.when(pl.program_id(2) == 0)
    def _init():
        acc_ref[...] = jnp.zeros_like(acc_ref)

    acc_ref[...] += jnp.dot(x_ref[...], w_ref[...],
                            preferred_element_type=jnp.float32)

    @pl.when(pl.program_id(2) == pl.num_programs(2) - 1)
    def _finalize():
        o_ref[...] = (acc_ref[...] + b_ref[...].astype(jnp.float32)
                      ).astype(o_ref.dtype)


def _linear(x2d, w, b, *, tm_target=256, tn_target=512):
    M, K = x2d.shape
    Kw, N = w.shape
    assert K == Kw
    tm = _pick_tile(M, tm_target)
    tn = _pick_tile(N, tn_target)
    tk = K if K <= 1024 else _pick_tile(K, 512)   # keep contraction deep
    grid = (M // tm, N // tn, K // tk)

    flops = 2 * M * K * N
    bytes_accessed = ((M * K) * (N // tn) + (K * N) * (M // tm)
                      + M * N + N) * x2d.dtype.itemsize

    return pl.pallas_call(
        _linear_kernel,
        out_shape=jax.ShapeDtypeStruct((M, N), x2d.dtype),
        grid=grid,
        in_specs=[
            pl.BlockSpec((tm, tk), lambda i, j, k: (i, k)),
            pl.BlockSpec((tk, tn), lambda i, j, k: (k, j)),   # weight streams
            pl.BlockSpec((1, tn), lambda i, j, k: (0, j)),
        ],
        out_specs=pl.BlockSpec((tm, tn), lambda i, j, k: (i, j)),
        scratch_shapes=[pltpu.VMEM((tm, tn), jnp.float32)],
        compiler_params=pltpu.CompilerParams(
            dimension_semantics=("parallel", "parallel", "arbitrary"),
            vmem_limit_bytes=_vmem_limit_bytes(),
        ),
        cost_estimate=pl.CostEstimate(
            flops=flops, transcendentals=0, bytes_accessed=bytes_accessed),
    )(x2d, w, b)


# --------------------------------------------------------------------------
# Flash-attention kernel (causal, online softmax, G heads per grid step).
# --------------------------------------------------------------------------
def _flash_attn_kernel(q_ref, k_ref, v_ref, o_ref, m_scr, l_scr, acc_scr, *,
                       scale, tq, tkv, head_dim, group):
    qi = pl.program_id(2)
    ki = pl.program_id(3)
    nk = pl.num_programs(3)
    q_start = qi * tq
    k_start = ki * tkv

    @pl.when(ki == 0)
    def _init():
        m_scr[...] = jnp.full(m_scr.shape, _NEG_INF, jnp.float32)
        l_scr[...] = jnp.zeros(l_scr.shape, jnp.float32)
        acc_scr[...] = jnp.zeros(acc_scr.shape, jnp.float32)

    def _tile(masked):
        # Fold 1/sqrt(D) into the (G, tq, D) q tile (tkv/D fewer VPU muls than
        # scaling the score tile); MXU operands stay in the input dtype.
        q = q_ref[...] * jnp.array(scale, dtype=q_ref.dtype)
        s = jnp.einsum("gqd,gkd->gqk", q, k_ref[...],
                       preferred_element_type=jnp.float32)
        if masked:
            # Partial / diagonal tiles only: causal mask from narrow iotas on
            # global element indices (handles tq != tkv and padded rows/cols).
            row = q_start + lax.broadcasted_iota(jnp.int32, (tq, 1), 0)
            col = k_start + lax.broadcasted_iota(jnp.int32, (1, tkv), 1)
            s = jnp.where((row >= col)[None], s, _NEG_INF)
        # Online softmax, all f32 (v5e has no bf16 VPU/EUP).
        m_prev = m_scr[...]
        m_new = jnp.maximum(m_prev, jnp.max(s, axis=-1, keepdims=True))
        alpha = jnp.exp(m_prev - m_new)
        p = jnp.exp(s - m_new)
        l_scr[...] = alpha * l_scr[...] + jnp.sum(p, axis=-1, keepdims=True)
        acc_scr[...] = alpha * acc_scr[...] + jnp.einsum(
            "gqk,gkd->gqd", p.astype(v_ref.dtype), v_ref[...],
            preferred_element_type=jnp.float32)
        m_scr[...] = m_new

    # Causal tile classification on element ranges (tq and tkv may differ).
    below_diag = (k_start + tkv) <= (q_start + 1)    # fully unmasked
    intersects = k_start < (q_start + tq)            # not fully above diagonal

    @pl.when(below_diag)
    def _unmasked():
        _tile(masked=False)

    @pl.when(jnp.logical_and(intersects, jnp.logical_not(below_diag)))
    def _diagonal():
        _tile(masked=True)

    @pl.when(ki == nk - 1)
    def _finalize():
        # approx reciprocal (pure EUP slot) for low-precision outputs.
        inv_l = pl.reciprocal(l_scr[...], approx=o_ref.dtype != jnp.float32)
        out = (acc_scr[...] * inv_l).astype(o_ref.dtype)      # (G, tq, D)
        # o_ref is a lane-dense (tq, G*D) block in merged (B, T, C) layout:
        # the head-merge transpose is free and the HBM store is >=128 lanes
        # wide whenever G*D >= 128.
        for g in range(group):
            o_ref[:, g * head_dim:(g + 1) * head_dim] = out[g]


def _flash_attention(qkv, n_head, head_dim):
    """qkv: (3, B, H, T_pad, D) -> (B, T_pad, H*D) merged-head output."""
    _, B, H, T, D = qkv.shape
    C = H * D
    group = _pick_head_group(H, D)
    packed = group * D
    # Big tiles (per-grid-step overhead dominates small tiles); bound the f32
    # (G, tq, tkv) score tile when the packed head group is wide.
    tq_target, tkv_target = (256, 512) if packed <= 256 else (128, 256)
    tq = _largest_nested_tile(T, tq_target, 8)          # multiple of 8
    tkv = _largest_nested_tile(T, tkv_target, tq)       # multiple of tq
    nq, nk = T // tq, T // tkv
    scale = 1.0 / math.sqrt(D)

    kernel = functools.partial(_flash_attn_kernel, scale=scale, tq=tq,
                               tkv=tkv, head_dim=D, group=group)

    # The single (3, B, H, T, D) qkv array is passed three times; each spec
    # selects its plane with the leading block index (no XLA slice copies).
    q_spec = pl.BlockSpec((None, None, group, tq, D),
                          lambda b, hg, qi, ki: (0, b, hg, qi, 0))

    def kv_index(plane):
        def index(b, hg, qi, ki):
            # Clamp above-diagonal kv tiles onto the last useful tile so the
            # grid steps the kernel skips issue no fresh DMA.
            last = (qi * tq + tq - 1) // tkv
            return (plane, b, hg, jnp.minimum(ki, last), 0)
        return index

    k_spec = pl.BlockSpec((None, None, group, tkv, D), kv_index(1))
    v_spec = pl.BlockSpec((None, None, group, tkv, D), kv_index(2))
    # Output written directly in merged (B, T, C) layout, G*D lanes per block.
    o_spec = pl.BlockSpec((None, tq, packed), lambda b, hg, qi, ki: (b, qi, hg))

    itemsize = qkv.dtype.itemsize
    flops = 2 * B * H * T * T * D              # 2 matmuls over ~half the tiles
    transcendentals = B * H * T * T // 2
    bytes_accessed = (B * H * T * D * (2 + nq) + B * T * C) * itemsize

    return pl.pallas_call(
        kernel,
        out_shape=jax.ShapeDtypeStruct((B, T, C), qkv.dtype),
        grid=(B, H // group, nq, nk),
        in_specs=[q_spec, k_spec, v_spec],
        out_specs=o_spec,
        scratch_shapes=[
            pltpu.VMEM((group, tq, 1), jnp.float32),   # running max  m
            pltpu.VMEM((group, tq, 1), jnp.float32),   # running sum  l
            pltpu.VMEM((group, tq, D), jnp.float32),   # f32 output accumulator
        ],
        compiler_params=pltpu.CompilerParams(
            dimension_semantics=("parallel", "parallel", "parallel",
                                 "arbitrary"),
            vmem_limit_bytes=_vmem_limit_bytes(),
        ),
        cost_estimate=pl.CostEstimate(
            flops=flops, transcendentals=transcendentals,
            bytes_accessed=bytes_accessed),
    )(qkv, qkv, qkv)


# --------------------------------------------------------------------------
# Full forward.
# --------------------------------------------------------------------------
def causal_self_attention(x, wa, ba, wp, bp, n_head):
    """GPT-2 causal self-attention. Weights pre-transposed to
    (in_features, out_features); biases are (1, out_features)."""
    B, T, C = x.shape
    assert C % n_head == 0
    D = C // n_head

    # Pad the sequence once up front so every kernel sees tile-friendly dims;
    # causal masking makes padded key positions inert and the final slice
    # drops the padded query rows.
    T_pad = _round_up(T, 8) if T <= 256 else _round_up(T, 128)
    if T_pad != T:
        x = jnp.pad(x, ((0, 0), (0, T_pad - T), (0, 0)))

    # 1) QKV projection (single deep contraction over C).
    qkv = _linear(x.reshape(B * T_pad, C), wa, ba)            # (B*T_pad, 3C)

    # 2) Head split: ONE transpose to (3, B, H, T, D); the attention kernel
    #    indexes q/k/v planes straight out of this array.
    qkv = qkv.reshape(B, T_pad, 3, n_head, D).transpose(2, 0, 3, 1, 4)

    # 3) Causal flash attention; output lands in merged (B, T, C) layout,
    #    so the head-merge transpose is free.
    y = _flash_attention(qkv, n_head, D)                      # (B, T_pad, C)

    # 4) Output projection, then drop padded rows.
    out = _linear(y.reshape(B * T_pad, C), wp, bp).reshape(B, T_pad, C)
    return out[:, :T]


def _reference(x, wa, ba, wp, bp, n_head):
    """Pure-JAX reference mirroring the PyTorch forward."""
    B, T, C = x.shape
    D = C // n_head
    qkv = x @ wa + ba[0]
    q, k, v = qkv[..., :C], qkv[..., C:2 * C], qkv[..., 2 * C:]
    q = q.reshape(B, T, n_head, D).transpose(0, 2, 1, 3)
    k = k.reshape(B, T, n_head, D).transpose(0, 2, 1, 3)
    v = v.reshape(B, T, n_head, D).transpose(0, 2, 1, 3)
    s = jnp.einsum("bhqd,bhkd->bhqk", q, k) / math.sqrt(D)
    mask = jnp.tril(jnp.ones((T, T), bool))
    s = jnp.where(mask, s, -jnp.inf)
    p = jax.nn.softmax(s, axis=-1)
    y = jnp.einsum("bhqk,bhkd->bhqd", p, v)
    y = y.transpose(0, 2, 1, 3).reshape(B, T, C)
    return y @ wp + bp[0]


if __name__ == "__main__":
    # Small shapes consistent with the module.
    B, T = 2, 8
    N_EMBD, N_HEAD = 32, 4
    C = N_EMBD

    key = jax.random.PRNGKey(0)
    kx, kwa, kba, kwp, kbp = jax.random.split(key, 5)

    x = jax.random.normal(kx, (B, T, C), dtype=jnp.float32)

    # nn.Linear-style uniform init; weights stored as (in, out) = W.T.
    bound = 1.0 / math.sqrt(C)
    wa = jax.random.uniform(kwa, (C, 3 * C), jnp.float32, -bound, bound)  # c_attn.weight.T
    ba = jax.random.uniform(kba, (1, 3 * C), jnp.float32, -bound, bound)  # c_attn.bias
    wp = jax.random.uniform(kwp, (C, C), jnp.float32, -bound, bound)      # c_proj.weight.T
    bp = jax.random.uniform(kbp, (1, C), jnp.float32, -bound, bound)      # c_proj.bias

    y = causal_self_attention(x, wa, ba, wp, bp, N_HEAD)
    y = jax.block_until_ready(y)

    y_ref = _reference(x, wa, ba, wp, bp, N_HEAD)
    assert y.shape == (B, T, C)
    assert jnp.allclose(y, y_ref, atol=1e-3, rtol=1e-3), "mismatch vs reference"

    print("KERNEL_OK")
</pallas_src>

<mosaic_0001>
module attributes {stable_mosaic.version = 11 : i64} {
  func.func @_linear_kernel(%arg0: i32, %arg1: i32, %arg2: i32, %arg3: memref<16x32xf32, #tpu.memory_space<vmem>>, %arg4: memref<32x96xf32, #tpu.memory_space<vmem>>, %arg5: memref<1x96xf32, #tpu.memory_space<vmem>>, %arg6: memref<16x96xf32, #tpu.memory_space<vmem>>, %arg7: memref<16x96xf32, #tpu.memory_space<vmem>>) attributes {dimension_semantics = [#tpu.dimension_semantics<parallel>, #tpu.dimension_semantics<parallel>, #tpu.dimension_semantics<arbitrary>], iteration_bounds = array<i64: 1, 1, 1>, scalar_prefetch = 0 : i64, scratch_operands = 1 : i64, tpu.core_type = #tpu.core_type<tc>, window_params = [{transform_indices = @transform_0, window_bounds = array<i64: 16, 32>}, {transform_indices = @transform_1, window_bounds = array<i64: 32, 96>}, {transform_indices = @transform_2, window_bounds = array<i64: 1, 96>}, {transform_indices = @transform_3, window_bounds = array<i64: 16, 96>}]} {
    %c0_i32 = arith.constant 0 : i32
    %0 = arith.cmpi eq, %arg2, %c0_i32 : i32
    %1 = arith.extui %0 : i1 to i32
    %c0_i32_0 = arith.constant 0 : i32
    %2 = arith.cmpi ne, %1, %c0_i32_0 : i32
    scf.if %2 {
      %cst_10 = arith.constant 0.000000e+00 : f32
      %12 = vector.broadcast %cst_10 : f32 to vector<16x96xf32>
      %c0_11 = arith.constant 0 : index
      %c0_12 = arith.constant 0 : index
      %13 = vector.load %arg7[%c0_11, %c0_12] : memref<16x96xf32, #tpu.memory_space<vmem>>, vector<16x96xf32>
      tpu.vector_store %arg7[%c0_11, %c0_12], %12 {strides = array<i32>} : memref<16x96xf32, #tpu.memory_space<vmem>>, vector<16x96xf32>,
    } else {
    }
    %c0 = arith.constant 0 : index
    %c0_1 = arith.constant 0 : index
    %3 = vector.load %arg7[%c0, %c0_1] : memref<16x96xf32, #tpu.memory_space<vmem>>, vector<16x96xf32>
    %c0_2 = arith.constant 0 : index
    %c0_3 = arith.constant 0 : index
    %4 = vector.load %arg3[%c0_2, %c0_3] : memref<16x32xf32, #tpu.memory_space<vmem>>, vector<16x32xf32>
    %c0_4 = arith.constant 0 : index
    %c0_5 = arith.constant 0 : index
    %5 = vector.load %arg4[%c0_4, %c0_5] : memref<32x96xf32, #tpu.memory_space<vmem>>, vector<32x96xf32>
    %cst = arith.constant dense<0.000000e+00> : vector<16x96xf32>
    %6 = tpu.matmul %4, %5, %cst {dimension_numbers = #tpu.dot_dimension_numbers<[1], [0], [0], [1], [0, 0, 1, 1], [], []>} : vector<16x32xf32>, vector<32x96xf32>, vector<16x96xf32> -> vector<16x96xf32>
    %7 = arith.addf %3, %6 : vector<16x96xf32>
    %c0_6 = arith.constant 0 : index
    %c0_7 = arith.constant 0 : index
    %8 = vector.load %arg7[%c0_6, %c0_7] : memref<16x96xf32, #tpu.memory_space<vmem>>, vector<16x96xf32>
    tpu.vector_store %arg7[%c0_6, %c0_7], %7 {strides = array<i32>} : memref<16x96xf32, #tpu.memory_space<vmem>>, vector<16x96xf32>,
    %c0_i32_8 = arith.constant 0 : i32
    %9 = arith.cmpi eq, %arg2, %c0_i32_8 : i32
    %10 = arith.extui %9 : i1 to i32
    %c0_i32_9 = arith.constant 0 : i32
    %11 = arith.cmpi ne, %10, %c0_i32_9 : i32
    scf.if %11 {
      %c0_10 = arith.constant 0 : index
      %c0_11 = arith.constant 0 : index
      %12 = vector.load %arg7[%c0_10, %c0_11] : memref<16x96xf32, #tpu.memory_space<vmem>>, vector<16x96xf32>
      %c0_12 = arith.constant 0 : index
      %c0_13 = arith.constant 0 : index
      %13 = vector.load %arg5[%c0_12, %c0_13] : memref<1x96xf32, #tpu.memory_space<vmem>>, vector<1x96xf32>
      %14 = vector.broadcast %13 : vector<1x96xf32> to vector<16x96xf32>
      %15 = arith.addf %12, %14 : vector<16x96xf32>
      %c0_14 = arith.constant 0 : index
      %c0_15 = arith.constant 0 : index
      %16 = vector.load %arg6[%c0_14, %c0_15] : memref<16x96xf32, #tpu.memory_space<vmem>>, vector<16x96xf32>
      tpu.vector_store %arg6[%c0_14, %c0_15], %15 {strides = array<i32>} : memref<16x96xf32, #tpu.memory_space<vmem>>, vector<16x96xf32>,
    } else {
    }
    return
  }
  func.func @transform_0(%arg0: i32, %arg1: i32, %arg2: i32) -> (i32, i32) {
    %c0_i32 = arith.constant 0 : i32
    return %arg0, %arg2 : i32, i32
  }
  func.func @transform_1(%arg0: i32, %arg1: i32, %arg2: i32) -> (i32, i32) {
    %c0_i32 = arith.constant 0 : i32
    return %arg2, %arg1 : i32, i32
  }
  func.func @transform_2(%arg0: i32, %arg1: i32, %arg2: i32) -> (i32, i32) {
    %c0_i32 = arith.constant 0 : i32
    %c0_i32_0 = arith.constant 0 : i32
    return %c0_i32, %arg1 : i32, i32
  }
  func.func @transform_3(%arg0: i32, %arg1: i32, %arg2: i32) -> (i32, i32) {
    %c0_i32 = arith.constant 0 : i32
    return %arg0, %arg1 : i32, i32
  }
}

</mosaic_0001>

<bundles_post_ra>
// kernel: tpu_custom_call.1
= control target key start
LH: loop header
LB: loop body
LE: loop exit
PB: predicated region body
PF: predicated region fallthrough
CT: control target
= control target key end

     0   :  { %8 = vsyncpa [#allocation4], 0  ;;  %s326_s0 = inlined_call_operand.hbm [shape: f32[16,32], index: 0, kind: input, shape index: {}]   ;;  %s327_s1 = inlined_call_operand.hbm [shape: f32[32,96], index: 1, kind: input, shape index: {}]   ;;  %s328_s2 = inlined_call_operand.vmem [shape: f32[1,96], index: 2, kind: input, shape index: {}]   ;;  %s329_s3 = inlined_call_operand.hbm [shape: f32[16,96], index: 3, kind: output, shape index: {}]  }
   0x1   :  { %9 = vsyncpa [#allocation7], 0 }
   0x2   :  { %10 = vsyncpa [#allocation5], 0  ;;  %s271_s12 = smov [#allocation3]  }
   0x3   :  { %s16_s13 = sshll.u32 %s271_s12, 4  ;;  %s17_s13 = int_to_ptr.vmem [resolvable:$true] %s16_s13 }
   0x4   :  { %s213_s14 = scalar_lea.vmem %s17_s13, 256  ;;  %p218_p1 = scmp.lt.s32.totalorder %s17_s13, %s17_s13 }
   0x5   :  { %p214_p0 = scmp.ne.s32.totalorder %s17_s13, %s213_s14  ;;  %p219_p2 = scmp.lt.s32.totalorder %s213_s14, %s213_s14 }
   0x7   :  { %p220_p3 = por %p219_p2, %p218_p1 }
   0x9   :  { %p221_p4 = pnand %p220_p3, %p214_p0 }
   0xb   :  { %224 = shalt.err (!%p221_p4)
}
   0xc   :  { %s272_s15 = smov 128   ;;  %s273_s16 = smov 8  }
   0xd   :  { %22 = dma.hbm_to_vmem [thread:$0]  %s326_s0, 256, %s17_s13, [#allocation4], %s272_s15, %s272_s15, %s273_s16  }
   0xe   :  { %s274_s19 = smov [#allocation6]  }
   0xf   :  { %s28_s20 = sshll.u32 %s274_s19, 4  ;;  %s29_s20 = int_to_ptr.vmem [resolvable:$true] %s28_s20 }
  0x10   :  { %s233_s21 = scalar_lea.vmem %s29_s20, 512  ;;  %p238_p6 = scmp.lt.s32.totalorder %s29_s20, %s29_s20 }
  0x11   :  { %p234_p5 = scmp.ne.s32.totalorder %s29_s20, %s233_s21  ;;  %p239_p7 = scmp.lt.s32.totalorder %s233_s21, %s233_s21 }
  0x13   :  { %p240_p8 = por %p239_p7, %p238_p6 }
  0x15   :  { %p241_p9 = pnand %p240_p8, %p234_p5 }
  0x17   :  { %244 = shalt.err (!%p241_p9)
}
  0x18   :  { %34 = dma.hbm_to_vmem [thread:$0]  %s327_s1, 512, %s29_s20, [#allocation7], %s272_s15, %s272_s15, %s273_s16  }
  0x19   :  { %265 = dma.done.wait [#allocation4], 256  }
  0x1a   :  { %266 = vsyncadd [#allocation4], 4294967040 }
  0x1b   :  { %267 = dma.done.wait [#allocation7], 512  }
  0x1c   :  { %268 = vsyncadd [#allocation7], 4294966784  ;;  %vm47_vm0 = vcmask 785408   ;;  %v275_v0 = vmov 0.0   ;;  %vm58_vm1 = vcmask 261120   ;;  %v57_v1 = vld [vmem:[#allocation6 + $0x18] sm:$0xff] }
  0x1d   :  { %49 = vst.msk [vmem:[#allocation2 + $0x8] sm:$0xff] %vm47_vm0, %v275_v0  ;;  %48 = vst.msk [vmem:[#allocation2] sm:$0xff] %vm47_vm0, %v275_v0  ;;  %v56_v2 = vld [vmem:[#allocation6 + $0x10] sm:$0xff]  ;;  %188 = vmatprep.subr.mxu0 %v57_v1  ;;  %v55_v4 = vld [vmem:[#allocation6 + $0x8] sm:$0xff]  ;;  %s276_s24 = smov [#allocation8]  }
  0x1e   :  { %v52_v3 = vld [vmem:[#allocation3] sm:$0xff]  ;;  %189 = vmatpush3.msra.mxu0 %v57_v1  ;;  %v54_v5 = vld [vmem:[#allocation6] sm:$0xff]  ;;  %v53_v6 = vld [vmem:[#allocation3 + $0x8] sm:$0xff]  ;;  %s166_s25 = sshll.u32 %s276_s24, 4  ;;  %s167_s25 = int_to_ptr.vmem [resolvable:$true] %s166_s25 }
  0x1f   :  { %196 = vmatprep.mubr.msk.f32.mxu0 %vm58_vm1, %v52_v3  ;;  %190 = vmatprep.subr.mxu0 %v56_v2  ;;  %v181_v13 = vld [vmem:[%s328_s2] ss:$0 sm:$0xff]  ;;  %s245_s26 = scalar_lea.vmem %s167_s25, 256  ;;  %p250_p11 = scmp.lt.s32.totalorder %s167_s25, %s167_s25 }
  0x20   :  { %191 = vmatpush3.msra.mxu0 %v56_v2  ;;  %p246_p10 = scmp.ne.s32.totalorder %s167_s25, %s245_s26  ;;  %p251_p12 = scmp.lt.s32.totalorder %s245_s26, %s245_s26 }
  0x21   :  { %192 = vmatprep.subr.mxu0 %v55_v4 }
  0x22   :  { %193 = vmatpush3.msra.mxu0 %v55_v4  ;;  %p252_p13 = por %p251_p12, %p250_p11 }
  0x23   :  { %194 = vmatprep.subr.mxu0 %v54_v5 }
  0x24   :  { %195 = vmatpush3.msra.mxu0 %v54_v5  ;;  %v51_v7 = vld [vmem:[#allocation2 + $0x8] sm:$0xff]  ;;  %v50_v9 = vld [vmem:[#allocation2] sm:$0xff]  ;;  %p253_p0 = pnand %p252_p13, %p246_p10 }
  0x25   :  { %197 = vmatmul.mubr.msk.f32.vlgmr.msra.gmra.mxu0 %vm58_vm1, %v53_v6 }
  0xe5   :  { %v198_v8 = vpop.f32.mrf.mxu0 }
  0xe6   :  { %v141_v10 = vadd.f32 %v198_v8, %v51_v7 }
  0xe7   :  { %v131_v11 = vpop.f32.mrf.mxu0 }
  0xe8   :  { %144 = vst.msk [vmem:[#allocation2 + $0x8] sm:$0xff] %vm47_vm0, %v141_v10  ;;  %v140_v12 = vadd.f32 %v131_v11, %v50_v9 }
  0xea   :  { %143 = vst.msk [vmem:[#allocation2] sm:$0xff] %vm47_vm0, %v140_v12 }
  0xef   :  { %v149_v14 = vld [vmem:[#allocation2 + $0x8] sm:$0xff] }
  0xf0   :  { %v158_v15 = vadd.f32 %v181_v13, %v149_v14 }
  0xf1   :  { %v148_v16 = vld [vmem:[#allocation2] sm:$0xff] }
  0xf2   :  { %v157_v17 = vadd.f32 %v181_v13, %v148_v16  ;;  %160 = vst.msk [vmem:[#allocation8 + $0x8] sm:$0xff] %vm47_vm0, %v158_v15 }
  0xf4   :  { %159 = vst.msk [vmem:[#allocation8] sm:$0xff] %vm47_vm0, %v157_v17 }
  0xf5   :  { %256 = shalt.err (!%p253_p0)
}
  0xf6   :  { %172 = dma.vmem_to_hbm [thread:$0]  %s167_s25, 256, %s329_s3, [#allocation5], %s272_s15, %s272_s15, %s273_s16  }
  0xf7   :  { %269 = dma.done.wait [#allocation5], 256  }
  0xf8   :  { %270 = vsyncadd [#allocation5], 4294967040 }
  0xf9   :  { %176 = vsyncpa [#allocation4], 1 }
  0xfa   :  { %177 = vsyncpa [#allocation7], 1 }
  0xfb   :  { %178 = vsyncpa [#allocation5], 1 }

</bundles_post_ra>
